<compile_context>
chip_gen: v5e
topology: v5e:2x2
jax: 0.10.0
libtpu: 0.0.40
codegen_flags: <defaults>
</compile_context>

<pallas_src>
import functools
import math

import jax
import jax.numpy as jnp
import numpy as np
from jax.experimental import pallas as pl
from jax.experimental.pallas import tpu as pltpu


def _round_up(v, m):
    return (v + m - 1) // m * m


def _vmem_cap_bytes():
    """Physical VMEM minus headroom for compiler-internal scratch."""
    phys = 64 << 20  # conservative default (v7x per-TC)
    try:
        info = pltpu.get_tpu_info()
        phys = int(getattr(info, "vmem_capacity_bytes", phys))
    except Exception:
        pass
    return max(phys - (16 << 20), 32 << 20)


def _choose_tiles(B_p, in_p, out_p, n_weight_streams, vmem_cap, max_tk=None):
    # N tile: lane-dense multiple of 128; out_p >= 256 gives >= 2 parallel
    # tiles so the grid can shard across v7x's two TensorCores.
    if out_p <= 128:
        tn = out_p
    elif out_p >= 512 and out_p % 256 == 0:
        tn = 256
    else:
        tn = 128

    def fits(tk):
        per_buf = (B_p * tk + n_weight_streams * tk * tn + tk + 3 * tn
                   + B_p * tn) * 4
        return 2 * per_buf <= int(vmem_cap * 0.75)

    # K tile: largest candidate (prefer the full K extent -> one reduction
    # step, ~0.35 us per grid step saved) that divides in_p and whose
    # double-buffered working set fits VMEM.
    tk = 128
    for c in (in_p, 2048, 1024, 512, 256, 128):
        if c <= in_p and in_p % c == 0 and (max_tk is None or c <= max_tk):
            if fits(c):
                tk = c
                break
    return tn, tk


# ---------------------------------------------------------------------------
# Kernels
# ---------------------------------------------------------------------------

def _noisy_linear_train_kernel(x_ref, wmu_ref, wsig_ref, ein_ref, eout_ref,
                               bias_ref, o_ref):
    """grid = (N tiles, K tiles); K (reduction) is last and 'arbitrary'.

    The output block is resident across the K axis and is used directly as
    the f32 accumulator (no scratch, no finalize copy).
    """
    k = pl.program_id(1)

    @pl.when(k == 0)
    def _init():
        o_ref[...] = jnp.zeros_like(o_ref)

    # Fused, factorized noisy-weight construction for this (tk, tn) tile:
    #   W = W_mu + W_sigma * outer(eps_in, eps_out)    (weights stored K-major)
    # VPU work that hides under the two weight-tile DMAs.
    w = wmu_ref[...] + wsig_ref[...] * ein_ref[...] * eout_ref[...]

    o_ref[...] += jnp.dot(x_ref[...], w,
                          preferred_element_type=jnp.float32,
                          precision=jax.lax.Precision.HIGHEST)

    @pl.when(k == pl.num_programs(1) - 1)
    def _finalize():
        # bias = bias_mu + bias_sigma * eps_out   (packed as a (2, tn) tile)
        bias = bias_ref[0:1, :] + bias_ref[1:2, :] * eout_ref[...]   # (1, tn)
        o_ref[...] += bias


def _noisy_linear_eval_kernel(x_ref, wmu_ref, bmu_ref, o_ref):
    k = pl.program_id(1)

    @pl.when(k == 0)
    def _init():
        o_ref[...] = jnp.zeros_like(o_ref)

    o_ref[...] += jnp.dot(x_ref[...], wmu_ref[...],
                          preferred_element_type=jnp.float32,
                          precision=jax.lax.Precision.HIGHEST)

    @pl.when(k == pl.num_programs(1) - 1)
    def _finalize():
        o_ref[...] += bmu_ref[...]


# ---------------------------------------------------------------------------
# One-time parameter preparation (padding + K-major layout)
# ---------------------------------------------------------------------------

def prepare_noisy_linear_params(weight_mu, weight_sigma, eps_in, eps_out,
                                bias_mu, bias_sigma):
    """Pad + pre-transpose parameters ONCE (at init / after reset_noise()).

    Weights are stored as (in_p, out_p) so the kernel runs the natural
    (B, K) @ (K, N) contraction with lane-dense N; everything is padded to
    (8, 128) multiples so the jitted hot path never pads weight tensors.
    """
    out_f, in_f = weight_mu.shape
    in_p, out_p = _round_up(in_f, 128), _round_up(out_f, 128)
    f32 = jnp.float32

    def pad_t(w):  # (out, in) -> padded (in_p, out_p)
        w = jnp.asarray(w, f32).T
        return jnp.pad(w, ((0, in_p - in_f), (0, out_p - out_f)))

    return dict(
        wmu_t=pad_t(weight_mu),
        wsig_t=pad_t(weight_sigma),
        eps_in=jnp.pad(jnp.asarray(eps_in, f32),
                       (0, in_p - in_f)).reshape(in_p, 1),
        eps_out=jnp.pad(jnp.asarray(eps_out, f32),
                        (0, out_p - out_f)).reshape(1, out_p),
        bias_musig=jnp.pad(
            jnp.stack([jnp.asarray(bias_mu, f32),
                       jnp.asarray(bias_sigma, f32)], axis=0),
            ((0, 0), (0, out_p - out_f))),
        bias_mu=jnp.pad(jnp.asarray(bias_mu, f32),
                        (0, out_p - out_f)).reshape(1, out_p),
    )


# ---------------------------------------------------------------------------
# Forward wrapper (jitted hot path)
# ---------------------------------------------------------------------------

@functools.partial(jax.jit,
                   static_argnames=("out_features", "training", "max_tk"))
def noisy_linear(x, params, *, out_features, training=True, max_tk=None):
    """Pallas NoisyLinear forward. x: (B, in_features) float32."""
    x = jnp.asarray(x, jnp.float32)
    B, in_f = x.shape
    in_p, out_p = params["wmu_t"].shape
    B_p = _round_up(max(B, 8), 8)

    n_w = 2 if training else 1
    vmem_cap = _vmem_cap_bytes()
    tn, tk = _choose_tiles(B_p, in_p, out_p, n_w, vmem_cap, max_tk)
    grid = (out_p // tn, in_p // tk)

    x_p = jnp.pad(x, ((0, B_p - B), (0, in_p - in_f)))

    x_spec = pl.BlockSpec((B_p, tk), lambda n, k: (0, k))
    w_spec = pl.BlockSpec((tk, tn), lambda n, k: (k, n))
    o_spec = pl.BlockSpec((B_p, tn), lambda n, k: (0, n))

    if training:
        kernel = _noisy_linear_train_kernel
        inputs = (x_p, params["wmu_t"], params["wsig_t"], params["eps_in"],
                  params["eps_out"], params["bias_musig"])
        in_specs = [x_spec, w_spec, w_spec,
                    pl.BlockSpec((tk, 1), lambda n, k: (k, 0)),
                    pl.BlockSpec((1, tn), lambda n, k: (0, n)),
                    pl.BlockSpec((2, tn), lambda n, k: (0, n))]
    else:
        # Slim eval path: only weight_mu / bias_mu are streamed from HBM.
        kernel = _noisy_linear_eval_kernel
        inputs = (x_p, params["wmu_t"], params["bias_mu"])
        in_specs = [x_spec, w_spec,
                    pl.BlockSpec((1, tn), lambda n, k: (0, n))]

    per_buf = (B_p * tk + n_w * tk * tn + tk + 3 * tn + B_p * tn) * 4
    vmem_limit = int(min(vmem_cap, max(4 * per_buf, 8 << 20)))

    out = pl.pallas_call(
        kernel,
        out_shape=jax.ShapeDtypeStruct((B_p, out_p), jnp.float32),
        grid_spec=pltpu.PrefetchScalarGridSpec(
            num_scalar_prefetch=0,
            grid=grid,
            in_specs=in_specs,
            out_specs=o_spec),
        compiler_params=pltpu.CompilerParams(
            dimension_semantics=("parallel", "arbitrary"),
            vmem_limit_bytes=vmem_limit),
    )(*inputs)

    return out[:B, :out_features]


# ---------------------------------------------------------------------------
# Parameter init (re-implementation of reset_parameters() + reset_noise())
# ---------------------------------------------------------------------------

def _scale_noise(key, size):
    # torch: x = randn(size); x.sign() * x.abs().sqrt()
    x = jax.random.normal(key, (size,), dtype=jnp.float32)
    return jnp.sign(x) * jnp.sqrt(jnp.abs(x))


def init_noisy_linear_params(key, in_features, out_features, std_init=0.4):
    k_wmu, k_bmu, k_ein, k_eout = jax.random.split(key, 4)
    std = math.sqrt(3.0 / in_features)

    weight_mu = jax.random.uniform(
        k_wmu, (out_features, in_features), minval=-std, maxval=std,
        dtype=jnp.float32)
    weight_sigma = jnp.full((out_features, in_features),
                            std_init / math.sqrt(in_features), jnp.float32)
    bias_mu = jax.random.uniform(
        k_bmu, (out_features,), minval=-std, maxval=std, dtype=jnp.float32)
    bias_sigma = jnp.full((out_features,),
                          std_init / math.sqrt(out_features), jnp.float32)

    eps_in = _scale_noise(k_ein, in_features)    # weight_epsilon = outer(eps_out, eps_in)
    eps_out = _scale_noise(k_eout, out_features)  # bias_epsilon  = eps_out

    return dict(weight_mu=weight_mu, weight_sigma=weight_sigma,
                bias_mu=bias_mu, bias_sigma=bias_sigma,
                eps_in=eps_in, eps_out=eps_out)


# ---------------------------------------------------------------------------
# Test harness
# ---------------------------------------------------------------------------

def _check_case(key, B, in_features, out_features, max_tk=None):
    k_params, k_x = jax.random.split(key)
    raw = init_noisy_linear_params(k_params, in_features, out_features)
    prepared = prepare_noisy_linear_params(
        raw["weight_mu"], raw["weight_sigma"], raw["eps_in"], raw["eps_out"],
        raw["bias_mu"], raw["bias_sigma"])
    x = jax.random.normal(k_x, (B, in_features), dtype=jnp.float32)

    hi = jax.lax.Precision.HIGHEST

    # Training mode (noisy weights/bias).
    y = jax.block_until_ready(
        noisy_linear(x, prepared, out_features=out_features, training=True,
                     max_tk=max_tk))
    w_eps = jnp.outer(raw["eps_out"], raw["eps_in"])
    w_ref = raw["weight_mu"] + raw["weight_sigma"] * w_eps
    b_ref = raw["bias_mu"] + raw["bias_sigma"] * raw["eps_out"]
    y_ref = jnp.dot(x, w_ref.T, precision=hi) + b_ref
    np.testing.assert_allclose(np.asarray(y), np.asarray(y_ref),
                               rtol=1e-4, atol=1e-4)

    # Eval mode (mu only, slim DMA path).
    y_eval = jax.block_until_ready(
        noisy_linear(x, prepared, out_features=out_features, training=False,
                     max_tk=max_tk))
    y_eval_ref = jnp.dot(x, raw["weight_mu"].T, precision=hi) + raw["bias_mu"]
    np.testing.assert_allclose(np.asarray(y_eval), np.asarray(y_eval_ref),
                               rtol=1e-4, atol=1e-4)


if __name__ == "__main__":
    key = jax.random.PRNGKey(0)
    k1, k2, k3 = jax.random.split(key, 3)

    # Small LunarLander-like layer (single tile, exercises padding).
    _check_case(k1, B=8, in_features=32, out_features=16)

    # Larger layer: full-K single reduction step, 2 parallel N tiles.
    _check_case(k2, B=32, in_features=300, out_features=200)

    # Force multiple K steps to exercise the resident-output accumulator
    # across the reduction axis.
    _check_case(k3, B=16, in_features=640, out_features=384, max_tk=128)

    # TODO(synk): optional bf16 weight storage (further ~2x HBM-byte cut) left
    # out to keep exact f32 forward semantics for RL.
    print("KERNEL_OK")
</pallas_src>

<mosaic_0001>
module attributes {stable_mosaic.version = 11 : i64} {
  func.func @_noisy_linear_train_kernel(%arg0: i32, %arg1: i32, %arg2: memref<8x128xf32, #tpu.memory_space<vmem>>, %arg3: memref<128x128xf32, #tpu.memory_space<vmem>>, %arg4: memref<128x128xf32, #tpu.memory_space<vmem>>, %arg5: memref<128x1xf32, #tpu.memory_space<vmem>>, %arg6: memref<1x128xf32, #tpu.memory_space<vmem>>, %arg7: memref<2x128xf32, #tpu.memory_space<vmem>>, %arg8: memref<8x128xf32, #tpu.memory_space<vmem>>) attributes {dimension_semantics = [#tpu.dimension_semantics<parallel>, #tpu.dimension_semantics<arbitrary>], iteration_bounds = array<i64: 1, 1>, scalar_prefetch = 0 : i64, scratch_operands = 0 : i64, tpu.core_type = #tpu.core_type<tc>, window_params = [{transform_indices = @transform_0, window_bounds = array<i64: 8, 128>}, {transform_indices = @transform_1, window_bounds = array<i64: 128, 128>}, {transform_indices = @transform_2, window_bounds = array<i64: 128, 128>}, {transform_indices = @transform_3, window_bounds = array<i64: 128, 1>}, {transform_indices = @transform_4, window_bounds = array<i64: 1, 128>}, {transform_indices = @transform_5, window_bounds = array<i64: 2, 128>}, {transform_indices = @transform_6, window_bounds = array<i64: 8, 128>}]} {
    %c0_i32 = arith.constant 0 : i32
    %0 = arith.cmpi eq, %arg1, %c0_i32 : i32
    %1 = arith.extui %0 : i1 to i32
    %c0_i32_0 = arith.constant 0 : i32
    %2 = arith.cmpi ne, %1, %c0_i32_0 : i32
    scf.if %2 {
      %cst_16 = arith.constant 0.000000e+00 : f32
      %20 = vector.broadcast %cst_16 : f32 to vector<8x128xf32>
      %c0_17 = arith.constant 0 : index
      %c0_18 = arith.constant 0 : index
      %21 = vector.load %arg8[%c0_17, %c0_18] : memref<8x128xf32, #tpu.memory_space<vmem>>, vector<8x128xf32>
      tpu.vector_store %arg8[%c0_17, %c0_18], %20 {strides = array<i32>} : memref<8x128xf32, #tpu.memory_space<vmem>>, vector<8x128xf32>,
    } else {
    }
    %c0 = arith.constant 0 : index
    %c0_1 = arith.constant 0 : index
    %3 = vector.load %arg3[%c0, %c0_1] : memref<128x128xf32, #tpu.memory_space<vmem>>, vector<128x128xf32>
    %c0_2 = arith.constant 0 : index
    %c0_3 = arith.constant 0 : index
    %4 = vector.load %arg4[%c0_2, %c0_3] : memref<128x128xf32, #tpu.memory_space<vmem>>, vector<128x128xf32>
    %c0_4 = arith.constant 0 : index
    %c0_5 = arith.constant 0 : index
    %5 = vector.load %arg5[%c0_4, %c0_5] : memref<128x1xf32, #tpu.memory_space<vmem>>, vector<128x1xf32>
    %6 = vector.broadcast %5 : vector<128x1xf32> to vector<128x128xf32>
    %7 = arith.mulf %4, %6 : vector<128x128xf32>
    %c0_6 = arith.constant 0 : index
    %c0_7 = arith.constant 0 : index
    %8 = vector.load %arg6[%c0_6, %c0_7] : memref<1x128xf32, #tpu.memory_space<vmem>>, vector<1x128xf32>
    %9 = vector.broadcast %8 : vector<1x128xf32> to vector<128x128xf32>
    %10 = arith.mulf %7, %9 : vector<128x128xf32>
    %11 = arith.addf %3, %10 : vector<128x128xf32>
    %c0_8 = arith.constant 0 : index
    %c0_9 = arith.constant 0 : index
    %12 = vector.load %arg8[%c0_8, %c0_9] : memref<8x128xf32, #tpu.memory_space<vmem>>, vector<8x128xf32>
    %c0_10 = arith.constant 0 : index
    %c0_11 = arith.constant 0 : index
    %13 = vector.load %arg2[%c0_10, %c0_11] : memref<8x128xf32, #tpu.memory_space<vmem>>, vector<8x128xf32>
    %cst = arith.constant dense<0.000000e+00> : vector<8x128xf32>
    %14 = tpu.matmul %13, %11, %cst {dimension_numbers = #tpu.dot_dimension_numbers<[1], [0], [0], [1], [0, 0, 1, 1], [], []>, precision = #tpu.contract_precision<fp32>} : vector<8x128xf32>, vector<128x128xf32>, vector<8x128xf32> -> vector<8x128xf32>
    %15 = arith.addf %12, %14 : vector<8x128xf32>
    %c0_12 = arith.constant 0 : index
    %c0_13 = arith.constant 0 : index
    %16 = vector.load %arg8[%c0_12, %c0_13] : memref<8x128xf32, #tpu.memory_space<vmem>>, vector<8x128xf32>
    tpu.vector_store %arg8[%c0_12, %c0_13], %15 {strides = array<i32>} : memref<8x128xf32, #tpu.memory_space<vmem>>, vector<8x128xf32>,
    %c0_i32_14 = arith.constant 0 : i32
    %17 = arith.cmpi eq, %arg1, %c0_i32_14 : i32
    %18 = arith.extui %17 : i1 to i32
    %c0_i32_15 = arith.constant 0 : i32
    %19 = arith.cmpi ne, %18, %c0_i32_15 : i32
    scf.if %19 {
      %c0_16 = arith.constant 0 : index
      %c0_17 = arith.constant 0 : index
      %20 = vector.load %arg7[%c0_16, %c0_17] : memref<2x128xf32, #tpu.memory_space<vmem>>, vector<1x128xf32>
      %c1 = arith.constant 1 : index
      %c0_18 = arith.constant 0 : index
      %21 = vector.load %arg7[%c1, %c0_18] : memref<2x128xf32, #tpu.memory_space<vmem>>, vector<1x128xf32>
      %c0_19 = arith.constant 0 : index
      %c0_20 = arith.constant 0 : index
      %22 = vector.load %arg6[%c0_19, %c0_20] : memref<1x128xf32, #tpu.memory_space<vmem>>, vector<1x128xf32>
      %23 = arith.mulf %21, %22 : vector<1x128xf32>
      %24 = arith.addf %20, %23 : vector<1x128xf32>
      %c0_21 = arith.constant 0 : index
      %c0_22 = arith.constant 0 : index
      %25 = vector.load %arg8[%c0_21, %c0_22] : memref<8x128xf32, #tpu.memory_space<vmem>>, vector<8x128xf32>
      %26 = vector.broadcast %24 : vector<1x128xf32> to vector<8x128xf32>
      %27 = arith.addf %25, %26 : vector<8x128xf32>
      %c0_23 = arith.constant 0 : index
      %c0_24 = arith.constant 0 : index
      %28 = vector.load %arg8[%c0_23, %c0_24] : memref<8x128xf32, #tpu.memory_space<vmem>>, vector<8x128xf32>
      tpu.vector_store %arg8[%c0_23, %c0_24], %27 {strides = array<i32>} : memref<8x128xf32, #tpu.memory_space<vmem>>, vector<8x128xf32>,
    } else {
    }
    return
  }
  func.func @transform_0(%arg0: i32, %arg1: i32) -> (i32, i32) {
    %c0_i32 = arith.constant 0 : i32
    %c0_i32_0 = arith.constant 0 : i32
    return %c0_i32, %arg1 : i32, i32
  }
  func.func @transform_1(%arg0: i32, %arg1: i32) -> (i32, i32) {
    %c0_i32 = arith.constant 0 : i32
    return %arg1, %arg0 : i32, i32
  }
  func.func @transform_2(%arg0: i32, %arg1: i32) -> (i32, i32) {
    %c0_i32 = arith.constant 0 : i32
    return %arg1, %arg0 : i32, i32
  }
  func.func @transform_3(%arg0: i32, %arg1: i32) -> (i32, i32) {
    %c0_i32 = arith.constant 0 : i32
    %c0_i32_0 = arith.constant 0 : i32
    return %arg1, %c0_i32 : i32, i32
  }
  func.func @transform_4(%arg0: i32, %arg1: i32) -> (i32, i32) {
    %c0_i32 = arith.constant 0 : i32
    %c0_i32_0 = arith.constant 0 : i32
    return %c0_i32, %arg0 : i32, i32
  }
  func.func @transform_5(%arg0: i32, %arg1: i32) -> (i32, i32) {
    %c0_i32 = arith.constant 0 : i32
    %c0_i32_0 = arith.constant 0 : i32
    return %c0_i32, %arg0 : i32, i32
  }
  func.func @transform_6(%arg0: i32, %arg1: i32) -> (i32, i32) {
    %c0_i32 = arith.constant 0 : i32
    %c0_i32_0 = arith.constant 0 : i32
    return %c0_i32, %arg0 : i32, i32
  }
}

</mosaic_0001>

<bundles_post_ra>
// kernel: noisy_linear.1
= control target key start
LH: loop header
LB: loop body
LE: loop exit
PB: predicated region body
PF: predicated region fallthrough
CT: control target
= control target key end

     0   :  { %11 = vsyncpa [#allocation3], 0  ;;  %s1055_s0 = inlined_call_operand.vmem [shape: f32[8,128], index: 0, kind: input, shape index: {}]   ;;  %s1056_s1 = inlined_call_operand.vmem [shape: f32[128,128], index: 1, kind: input, shape index: {}]   ;;  %s1057_s2 = inlined_call_operand.hbm [shape: f32[128,128], index: 2, kind: input, shape index: {}]   ;;  %s1058_s3 = inlined_call_operand.vmem [shape: f32[128,1], index: 3, kind: input, shape index: {}]   ;;  %s1059_s4 = inlined_call_operand.vmem [shape: f32[1,128], index: 4, kind: input, shape index: {}]   ;;  %s1060_s5 = inlined_call_operand.vmem [shape: f32[2,128], index: 5, kind: input, shape index: {}]   ;;  %s1061_s6 = inlined_call_operand.hbm [shape: f32[8,128], index: 6, kind: output, shape index: {}]  }
   0x1   :  { %12 = vsyncpa [#allocation4], 0  ;;  %s21_s23 = sshll.u32 %s1057_s2, 4  ;;  %s661_s24 = smov [#allocation2]   ;;  %s22_s23 = int_to_ptr.hbm [resolvable:$true] %s21_s23 }
   0x2   :  { %s23_s25 = sshll.u32 %s661_s24, 4  ;;  %s662_s26 = smov 128   ;;  %s24_s25 = int_to_ptr.vmem [resolvable:$true] %s23_s25 }
   0x3   :  { %s663_s27 = smov 8  }
   0x4   :  { %29 = dma.hbm_to_vmem [thread:$0]  %s22_s23, 2048, %s24_s25, [#allocation3], %s662_s26, %s662_s26, %s663_s27  }
   0x5   :  { %657 = dma.done.wait [#allocation3], 2048  }
   0x6   :  { %658 = vsyncadd [#allocation3], 4294965248  ;;  %v664_v0 = vmov 0   ;;  %v92_v1 = vld [vmem:[%s1058_s3 + $0x78] sm:$0xff]  ;;  %v90_v2 = vld [vmem:[%s1058_s3 + $0x68] sm:$0xff]  ;;  %s665_s23 = smov [#allocation5]  }
   0x7   :  { %607 = vset.pattern.permute.xlu2 %v664_v0  ;;  %606 = vset.pattern.permute.xlu1 %v664_v0  ;;  %v88_v3 = vld [vmem:[%s1058_s3 + $0x58] sm:$0xff]  ;;  %v91_v4 = vld [vmem:[%s1058_s3 + $0x70] sm:$0xff]  ;;  %v89_v5 = vld [vmem:[%s1058_s3 + $0x60] sm:$0xff]  ;;  %s587_s24 = sshll.u32 %s665_s23, 4  ;;  %s588_s24 = int_to_ptr.vmem [resolvable:$true] %s587_s24 }
   0x8   :  { %605 = vset.pattern.permute.xlu0 %v664_v0  ;;  %160 = vperm.xlu1 %606, %v90_v2   ;;  %v87_v6 = vld [vmem:[%s1058_s3 + $0x50] sm:$0xff]  ;;  %v86_v7 = vld [vmem:[%s1058_s3 + $0x48] sm:$0xff]  ;;  %v85_v8 = vld [vmem:[%s1058_s3 + $0x40] sm:$0xff] }
   0x9   :  { %170 = vperm.xlu0 %605, %v92_v1   ;;  %150 = vperm.xlu2 %607, %v88_v3   ;;  %v84_v9 = vld [vmem:[%s1058_s3 + $0x38] sm:$0xff]  ;;  %v83_v10 = vld [vmem:[%s1058_s3 + $0x30] sm:$0xff]  ;;  %v82_v11 = vld [vmem:[%s1058_s3 + $0x28] sm:$0xff] }
   0xa   :  { %v81_v12 = vld [vmem:[%s1058_s3 + $0x20] sm:$0xff]  ;;  %v80_v13 = vld [vmem:[%s1058_s3 + $0x18] sm:$0xff]  ;;  %v79_v14 = vld [vmem:[%s1058_s3 + $0x10] sm:$0xff] }
   0xb   :  { %v78_v15 = vld [vmem:[%s1058_s3 + $0x8] sm:$0xff]  ;;  %v77_v16 = vld [vmem:[%s1058_s3] sm:$0xff]  ;;  %v72_v19 = vld [vmem:[#allocation2 + $0x58] sm:$0xff] }
   0xc   :  { %v76_v20 = vld [vmem:[#allocation2 + $0x78] sm:$0xff]  ;;  %v74_v21 = vld [vmem:[#allocation2 + $0x68] sm:$0xff]  ;;  %v755_v22 = vld [vmem:[%s1059_s4] ss:$0 sm:$0xff] }
   0xd   :  { %v71_v23 = vld [vmem:[#allocation2 + $0x50] sm:$0xff]  ;;  %v60_v31 = vld [vmem:[%s1056_s1 + $0x78] sm:$0xff]  ;;  %v58_v32 = vld [vmem:[%s1056_s1 + $0x68] sm:$0xff] }
   0xe   :  { %v56_v36 = vld [vmem:[%s1056_s1 + $0x58] sm:$0xff]  ;;  %v75_v41 = vld [vmem:[#allocation2 + $0x70] sm:$0xff]  ;;  %v73_v42 = vld [vmem:[#allocation2 + $0x60] sm:$0xff] }
   0xf   :  { %v68_v37 = vld [vmem:[#allocation2 + $0x38] sm:$0xff]  ;;  %v55_v43 = vld [vmem:[%s1056_s1 + $0x50] sm:$0xff]  ;;  %v57_v56 = vld [vmem:[%s1056_s1 + $0x60] sm:$0xff] }
  0x10   :  { %155 = vperm.xlu1 %606, %v89_v5   ;;  %v59_v55 = vld [vmem:[%s1056_s1 + $0x70] sm:$0xff]  ;;  %v65_v57 = vld [vmem:[#allocation2 + $0x20] sm:$0xff]  ;;  %v52_v0 = vld [vmem:[%s1056_s1 + $0x38] sm:$0xff] }
  0x11   :  { %165 = vperm.xlu0 %605, %v91_v4   ;;  %145 = vperm.xlu2 %607, %v87_v6   ;;  %v70_v6 = vld [vmem:[#allocation2 + $0x48] sm:$0xff] }
  0x18   :  { %135 = vperm.xlu1 %606, %v85_v8  }
  0x19   :  { %140 = vperm.xlu0 %605, %v86_v7   ;;  %130 = vperm.xlu2 %607, %v84_v9   ;;  %v69_v7 = vld [vmem:[#allocation2 + $0x40] sm:$0xff] }
  0x20   :  { %120 = vperm.xlu1 %606, %v82_v11  }
  0x21   :  { %125 = vperm.xlu0 %605, %v83_v10   ;;  %115 = vperm.xlu2 %607, %v81_v12  }
  0x28   :  { %105 = vperm.xlu1 %606, %v79_v14  }
  0x29   :  { %110 = vperm.xlu0 %605, %v80_v13   ;;  %100 = vperm.xlu2 %607, %v78_v15  }
  0x31   :  { %95 = vperm.xlu0 %605, %v77_v16  }
  0x63   :  { %v151_v17 = vpop.permute.xlu2 %150 }
  0x64   :  { %v184_v25 = vmul.f32 %v151_v17, %v72_v19 }
  0x66   :  { %v204_v35 = vmul.f32 %v755_v22, %v184_v25  ;;  %v49_v25 = vld [vmem:[%s1056_s1 + $0x20] sm:$0xff] }
  0x68   :  { %v220_v45 = vadd.f32 %v204_v35, %v56_v36 }
  0x6a   :  { %v792_v61 = vand.u32 4294901760, %v220_v45 }
  0x6b   :  { %v146_v18 = vpop.permute.xlu2 %145 }
  0x6c   :  { %v183_v30 = vmul.f32 %v146_v18, %v71_v23  ;;  %v811_v14 = vsub.f32 %v220_v45, %v792_v61 }
  0x6e   :  { %v203_v40 = vmul.f32 %v755_v22, %v183_v30 }
  0x70   :  { %v219_v54 = vadd.f32 %v203_v40, %v55_v43  ;;  %v67_v40 = vld [vmem:[#allocation2 + $0x30] sm:$0xff] }
  0x72   :  { %v804_v4 = vand.u32 4294901760, %v219_v54 }
  0x73   :  { %v131_v24 = vpop.permute.xlu2 %130 }
  0x74   :  { %v180_v46 = vmul.f32 %v131_v24, %v68_v37  ;;  %v830_v24 = vsub.f32 %v219_v54, %v804_v4 }
  0x76   :  { %v200_v62 = vmul.f32 %v755_v22, %v180_v46 }
  0x78   :  { %v216_v11 = vadd.f32 %v200_v62, %v52_v0  ;;  %v51_v62 = vld [vmem:[%s1056_s1 + $0x30] sm:$0xff]  ;;  %v50_v0 = vld [vmem:[%s1056_s1 + $0x28] sm:$0xff] }
  0x7a   :  { %v161_v27 = vpop.permute.xlu1 %160 }
  0x7b   :  { %v171_v26 = vpop.permute.xlu0 %170  ;;  %v186_v29 = vmul.f32 %v161_v27, %v74_v21  ;;  %v116_v50 = vpop.permute.xlu2 %115  ;;  %v53_v21 = vld [vmem:[%s1056_s1 + $0x40] sm:$0xff]  ;;  %v62_v27 = vld [vmem:[#allocation2 + $0x8] sm:$0xff] }
  0x7c   :  { %v188_v28 = vmul.f32 %v171_v26, %v76_v20  ;;  %v177_v5 = vmul.f32 %v116_v50, %v65_v57  ;;  %v54_v20 = vld [vmem:[%s1056_s1 + $0x48] sm:$0xff] }
  0x7d   :  { %v206_v34 = vmul.f32 %v755_v22, %v186_v29 }
  0x7e   :  { %v208_v33 = vmul.f32 %v755_v22, %v188_v28  ;;  %v197_v19 = vmul.f32 %v755_v22, %v177_v5 }
  0x7f   :  { %v222_v39 = vadd.f32 %v206_v34, %v58_v32  ;;  %v294_v34 = vand.u32 4294901760, %v811_v14 }
  0x80   :  { %v224_v38 = vadd.f32 %v208_v33, %v60_v31  ;;  %v840_v31 = vand.u32 4294901760, %v216_v11 }
  0x81   :  { %v775_v47 = vand.u32 4294901760, %v222_v39 }
  0x82   :  { %v773_v44 = vand.u32 4294901760, %v224_v38  ;;  %v156_v49 = vpop.permute.xlu1 %155 }
  0x83   :  { %v166_v48 = vpop.permute.xlu0 %165  ;;  %v185_v52 = vmul.f32 %v156_v49, %v73_v42  ;;  %v796_v63 = vsub.f32 %v222_v39, %v775_v47  ;;  %v101_v26 = vpop.permute.xlu2 %100  ;;  %v300_v42 = vand.u32 4294901760, %v830_v24 }
  0x84   :  { %v187_v51 = vmul.f32 %v166_v48, %v75_v41  ;;  %228 = vmatpush.msra.mxu0 %v773_v44  ;;  %424 = vmatpush.msra.mxu3 %v773_v44  ;;  %v780_v53 = vsub.f32 %v224_v38, %v773_v44  ;;  %v213_v38 = vadd.f32 %v197_v19, %v49_v25  ;;  %v66_v41 = vld [vmem:[#allocation2 + $0x28] sm:$0xff]  ;;  %v63_v25 = vld [vmem:[#allocation2 + $0x10] sm:$0xff] }
  0x85   :  { %v205_v59 = vmul.f32 %v755_v22, %v185_v52  ;;  %v282_v15 = vand.u32 4294901760, %v796_v63  ;;  %v174_v39 = vmul.f32 %v101_v26, %v62_v27  ;;  %v869_v52 = vsub.f32 %v216_v11, %v840_v31 }
  0x86   :  { %v207_v58 = vmul.f32 %v755_v22, %v187_v51  ;;  %371 = vmatpush.msra.mxu2 %v780_v53  ;;  %v270_v60 = vand.u32 4294901760, %v780_v53  ;;  %v295_v51 = vsub.f32 %v811_v14, %v294_v34 }
  0x87   :  { %v221_v2 = vadd.f32 %v205_v59, %v57_v56  ;;  %v283_v32 = vsub.f32 %v796_v63, %v282_v15  ;;  %v194_v59 = vmul.f32 %v755_v22, %v174_v39 }
  0x88   :  { %v223_v1 = vadd.f32 %v207_v58, %v59_v55  ;;  %v271_v3 = vsub.f32 %v780_v53, %v270_v60  ;;  %v875_v58 = vand.u32 4294901760, %v213_v38 }
  0x89   :  { %v808_v9 = vand.u32 4294901760, %v221_v2  ;;  %v284_v56 = vand.u32 4294901760, %v283_v32 }
  0x8a   :  { %v806_v8 = vand.u32 4294901760, %v223_v1  ;;  %v272_v10 = vand.u32 4294901760, %v271_v3  ;;  %v136_v13 = vpop.permute.xlu1 %135  ;;  %v46_v3 = vld [vmem:[%s1056_s1 + $0x8] sm:$0xff]  ;;  %v910_v26 = vsub.f32 %v213_v38, %v875_v58 }
  0x8b   :  { %v141_v12 = vpop.permute.xlu0 %140  ;;  %v181_v17 = vmul.f32 %v136_v13, %v69_v7  ;;  %v827_v23 = vsub.f32 %v221_v2, %v808_v9  ;;  %v301_v2 = vsub.f32 %v830_v24, %v300_v42 }
  0x8c   :  { %v182_v16 = vmul.f32 %v141_v12, %v70_v6  ;;  %230 = vmatpush.msra.mxu0 %v806_v8  ;;  %273 = vmatpush.msra.mxu1 %v272_v10  ;;  %v816_v18 = vsub.f32 %v223_v1, %v806_v8  ;;  %v318_v12 = vand.u32 4294901760, %v869_v52 }
  0x8d   :  { %426 = vmatpush.msra.mxu3 %v806_v8  ;;  %v201_v29 = vmul.f32 %v755_v22, %v181_v17  ;;  %v288_v33 = vand.u32 4294901760, %v827_v23  ;;  %v296_v17 = vand.u32 4294901760, %v295_v51  ;;  %v336_v51 = vand.u32 4294901760, %v910_v26 }
  0x8e   :  { %v202_v28 = vmul.f32 %v755_v22, %v182_v16  ;;  %232 = vmatpush.msra.mxu0 %v775_v47  ;;  %374 = vmatpush.msra.mxu2 %v816_v18  ;;  %v276_v30 = vand.u32 4294901760, %v816_v18 }
  0x8f   :  { %428 = vmatpush.msra.mxu3 %v775_v47  ;;  %v217_v36 = vadd.f32 %v201_v29, %v53_v21  ;;  %v289_v48 = vsub.f32 %v827_v23, %v288_v33  ;;  %v64_v21 = vld [vmem:[#allocation2 + $0x18] sm:$0xff]  ;;  %v302_v29 = vand.u32 4294901760, %v301_v2 }
  0x90   :  { %v218_v35 = vadd.f32 %v202_v28, %v54_v20  ;;  %234 = vmatpush.msra.mxu0 %v808_v9  ;;  %377 = vmatpush.msra.mxu2 %v796_v63  ;;  %v277_v37 = vsub.f32 %v816_v18, %v276_v30  ;;  %v210_v20 = vadd.f32 %v194_v59, %v46_v3  ;;  %v575_v63 = vld [vmem:[%s1059_s4] sm:$0x1]  ;;  %s589_s4 = sshll.u32 %s1061_s6, 4  ;;  %s590_s4 = int_to_ptr.hbm [resolvable:$true] %s589_s4 }
  0x91   :  { %430 = vmatpush.msra.mxu3 %v808_v9  ;;  %v857_v45 = vand.u32 4294901760, %v217_v36  ;;  %v290_v7 = vand.u32 4294901760, %v289_v48  ;;  %v48_v48 = vld [vmem:[%s1056_s1 + $0x18] sm:$0xff] }
  0x92   :  { %v855_v43 = vand.u32 4294901760, %v218_v35  ;;  %236 = vmatpush.msra.mxu0 %v792_v61  ;;  %380 = vmatpush.msra.mxu2 %v827_v23  ;;  %v278_v46 = vand.u32 4294901760, %v277_v37  ;;  %v121_v50 = vpop.permute.xlu1 %120  ;;  %v319_v37 = vsub.f32 %v869_v52, %v318_v12 }
  0x93   :  { %432 = vmatpush.msra.mxu3 %v792_v61  ;;  %v126_v49 = vpop.permute.xlu0 %125  ;;  %v178_v55 = vmul.f32 %v121_v50, %v66_v41  ;;  %v887_v1 = vsub.f32 %v217_v36, %v857_v45 }
  0x94   :  { %v179_v54 = vmul.f32 %v126_v49, %v67_v40  ;;  %238 = vmatpush.msra.mxu0 %v804_v4  ;;  %279 = vmatpush.msra.mxu1 %v278_v46  ;;  %v873_v57 = vsub.f32 %v218_v35, %v855_v43  ;;  %v929_v46 = vand.u32 4294901760, %v210_v20  ;;  %v47_v49 = vld [vmem:[%s1056_s1 + $0x10] sm:$0xff] }
  0x95   :  { %383 = vmatpush.msra.mxu2 %v811_v14  ;;  %434 = vmatpush.msra.mxu3 %v804_v4  ;;  %v198_v6 = vmul.f32 %v755_v22, %v178_v55  ;;  %v312_v11 = vand.u32 4294901760, %v887_v1  ;;  %v573_v14 = vld [vmem:[%s1060_s5] sm:$0x1] }
  0x96   :  { %v199_v5 = vmul.f32 %v755_v22, %v179_v54  ;;  %240 = vmatpush.msra.mxu0 %v855_v43  ;;  %285 = vmatpush.msra.mxu1 %v284_v56  ;;  %v306_v10 = vand.u32 4294901760, %v873_v57 }
  0x97   :  { %386 = vmatpush.msra.mxu2 %v830_v24  ;;  %436 = vmatpush.msra.mxu3 %v855_v43  ;;  %v214_v16 = vadd.f32 %v198_v6, %v50_v0  ;;  %v313_v32 = vsub.f32 %v887_v1, %v312_v11  ;;  %v320_v6 = vand.u32 4294901760, %v319_v37 }
  0x98   :  { %v215_v13 = vadd.f32 %v199_v5, %v51_v62  ;;  %242 = vmatpush.msra.mxu0 %v857_v45  ;;  %291 = vmatpush.msra.mxu1 %v290_v7  ;;  %v307_v19 = vsub.f32 %v873_v57, %v306_v10  ;;  %v226_v62 = vld [vmem:[%s1055_s0] sm:$0xff] }
  0x99   :  { %389 = vmatpush.msra.mxu2 %v873_v57  ;;  %438 = vmatpush.msra.mxu3 %v857_v45  ;;  %v914_v28 = vand.u32 4294901760, %v214_v16  ;;  %v314_v56 = vand.u32 4294901760, %v313_v32  ;;  %v953_v2 = vand.u32 4294901760, %v226_v62  ;;  %v973_v32 = vsub.f32 %v210_v20, %v929_v46  ;;  %v45_v20 = vld [vmem:[%s1056_s1] sm:$0xff] }
  0x9a   :  { %v912_v27 = vand.u32 4294901760, %v215_v13  ;;  %244 = vmatpush.msra.mxu0 %v840_v31  ;;  %297 = vmatpush.msra.mxu1 %v296_v17  ;;  %v106_v36 = vpop.permute.xlu1 %105  ;;  %v308_v40 = vand.u32 4294901760, %v307_v19  ;;  %v337_v17 = vsub.f32 %v910_v26, %v336_v51 }
  0x9b   :  { %392 = vmatpush.msra.mxu2 %v887_v1  ;;  %440 = vmatpush.msra.mxu3 %v840_v31  ;;  %v111_v35 = vpop.permute.xlu0 %110  ;;  %v175_v39 = vmul.f32 %v106_v36, %v63_v25  ;;  %v940_v50 = vsub.f32 %v214_v16, %v914_v28  ;;  %v260_v19 = vsub.f32 %v226_v62, %v953_v2 }
  0x9c   :  { %v176_v38 = vmul.f32 %v111_v35, %v64_v21  ;;  %246 = vmatpush.msra.mxu0 %v912_v27  ;;  %303 = vmatpush.msra.mxu1 %v302_v29  ;;  %v927_v41 = vsub.f32 %v215_v13, %v912_v27  ;;  %v61_v13 = vld [vmem:[#allocation2] sm:$0xff] }
  0x9d   :  { %395 = vmatpush.msra.mxu2 %v869_v52  ;;  %442 = vmatpush.msra.mxu3 %v912_v27  ;;  %v195_v55 = vmul.f32 %v755_v22, %v175_v39  ;;  %v330_v0 = vand.u32 4294901760, %v940_v50  ;;  %v261_v36 = vand.u32 4294901760, %v260_v19 }
  0x9e   :  { %v196_v54 = vmul.f32 %v755_v22, %v176_v38  ;;  %248 = vmatpush.msra.mxu0 %v914_v28  ;;  %309 = vmatpush.msra.mxu1 %v308_v40  ;;  %v324_v59 = vand.u32 4294901760, %v927_v41 }
  0x9f   :  { %398 = vmatpush.msra.mxu2 %v927_v41  ;;  %444 = vmatpush.msra.mxu3 %v914_v28  ;;  %v211_v5 = vadd.f32 %v195_v55, %v47_v49  ;;  %v331_v16 = vsub.f32 %v940_v50, %v330_v0  ;;  %v262_v62 = vsub.f32 %v260_v19, %v261_v36 }
  0xa0   :  { %v212_v3 = vadd.f32 %v196_v54, %v48_v48  ;;  %250 = vmatpush.msra.mxu0 %v875_v58  ;;  %315 = vmatpush.msra.mxu1 %v314_v56  ;;  %v325_v7 = vsub.f32 %v927_v41, %v324_v59  ;;  %v338_v48 = vand.u32 4294901760, %v337_v17  ;;  %v354_v56 = vand.u32 4294901760, %v973_v32 }
  0xa1   :  { %401 = vmatpush.msra.mxu2 %v940_v50  ;;  %446 = vmatpush.msra.mxu3 %v875_v58  ;;  %v970_v25 = vand.u32 4294901760, %v211_v5  ;;  %v332_v38 = vand.u32 4294901760, %v331_v16 }
  0xa2   :  { %v968_v21 = vand.u32 4294901760, %v212_v3  ;;  %321 = vmatpush.msra.mxu1 %v320_v6  ;;  %v326_v29 = vand.u32 4294901760, %v325_v7 }
  0xa3   :  { %404 = vmatpush.msra.mxu2 %v910_v26  ;;  %v96_v35 = vpop.permute.xlu0 %95  ;;  %v981_v40 = vsub.f32 %v211_v5, %v970_v25 }
  0xa4   :  { %v173_v37 = vmul.f32 %v96_v35, %v61_v13  ;;  %252 = vmatpush.msra.mxu0 %v968_v21  ;;  %327 = vmatpush.msra.mxu1 %v326_v29  ;;  %v978_v39 = vsub.f32 %v212_v3, %v968_v21  ;;  %v355_v13 = vsub.f32 %v973_v32, %v354_v56  ;;  %v263_v29 = vand.u32 4294901760, %v262_v62 }
  0xa5   :  { %448 = vmatpush.msra.mxu3 %v968_v21  ;;  %v348_v55 = vand.u32 4294901760, %v981_v40 }
  0xa6   :  { %v193_v49 = vmul.f32 %v755_v22, %v173_v37  ;;  %254 = vmatpush.msra.mxu0 %v970_v25  ;;  %333 = vmatpush.msra.mxu1 %v332_v38  ;;  %v342_v54 = vand.u32 4294901760, %v978_v39  ;;  %v356_v35 = vand.u32 4294901760, %v355_v13 }
  0xa7   :  { %407 = vmatpush.msra.mxu2 %v978_v39  ;;  %450 = vmatpush.msra.mxu3 %v970_v25  ;;  %v349_v5 = vsub.f32 %v981_v40, %v348_v55 }
  0xa8   :  { %v209_v3 = vadd.f32 %v193_v49, %v45_v20  ;;  %256 = vmatpush.msra.mxu0 %v929_v46  ;;  %339 = vmatpush.msra.mxu1 %v338_v48  ;;  %v343_v22 = vsub.f32 %v978_v39, %v342_v54 }
  0xa9   :  { %410 = vmatpush.msra.mxu2 %v981_v40  ;;  %452 = vmatpush.msra.mxu3 %v929_v46  ;;  %v350_v16 = vand.u32 4294901760, %v349_v5 }
  0xaa   :  { %v257_v6 = vand.u32 4294901760, %v209_v3  ;;  %v344_v7 = vand.u32 4294901760, %v343_v22 }
  0xab   :  { %413 = vmatpush.msra.mxu2 %v973_v32 }
  0xac   :  { %258 = vmatpush.msra.mxu0 %v257_v6  ;;  %345 = vmatpush.msra.mxu1 %v344_v7  ;;  %v359_v17 = vsub.f32 %v209_v3, %v257_v6 }
  0xad   :  { %454 = vmatpush.msra.mxu3 %v257_v6  ;;  %264 = vmatmul.f32.vlgmr.msra.gmra.mxu0 %v263_v29 }
  0xae   :  { %465 = vmatpush.msrb.mxu0 %v270_v60  ;;  %351 = vmatpush.msra.mxu1 %v350_v16  ;;  %v360_v37 = vand.u32 4294901760, %v359_v17 }
  0xaf   :  { %416 = vmatpush.msra.mxu2 %v359_v17  ;;  %458 = vmatmul.f32.vlgmr.msra.gmra.mxu3 %v261_v36 }
  0xb0   :  { %469 = vmatpush.msrb.mxu0 %v276_v30  ;;  %419 = vmatmul.f32.vlgmr.msra.gmra.mxu2 %v260_v19  ;;  %v361_v38 = vsub.f32 %v359_v17, %v360_v37 }
  0xb1   :  { %357 = vmatpush.msra.mxu1 %v356_v35 }
  0xb2   :  { %473 = vmatpush.msrb.mxu0 %v282_v15  ;;  %v362_v32 = vand.u32 4294901760, %v361_v38 }
  0xb4   :  { %477 = vmatpush.msrb.mxu0 %v288_v33  ;;  %363 = vmatpush.msra.mxu1 %v362_v32 }
  0xb5   :  { %365 = vmatmul.f32.vlgmr.msra.gmra.mxu1 %v953_v2 }
  0xb6   :  { %481 = vmatpush.msrb.mxu0 %v294_v34  ;;  %532 = vmatpush.msrb.mxu1 %v773_v44 }
  0xb8   :  { %485 = vmatpush.msrb.mxu0 %v300_v42  ;;  %534 = vmatpush.msrb.mxu1 %v806_v8 }
  0xba   :  { %489 = vmatpush.msrb.mxu0 %v306_v10  ;;  %536 = vmatpush.msrb.mxu1 %v775_v47 }
  0xbc   :  { %493 = vmatpush.msrb.mxu0 %v312_v11  ;;  %538 = vmatpush.msrb.mxu1 %v808_v9 }
  0xbe   :  { %497 = vmatpush.msrb.mxu0 %v318_v12  ;;  %540 = vmatpush.msrb.mxu1 %v792_v61  ;;  %v574_v61 = vld [vmem:[%s1060_s5 + $0x1] sm:$0x1] }
  0xbf   :  { %v576_v9 = vmul.f32 %v575_v63, %v574_v61 }
  0xc0   :  { %501 = vmatpush.msrb.mxu0 %v324_v59  ;;  %542 = vmatpush.msrb.mxu1 %v804_v4 }
  0xc1   :  { %v577_v23 = vadd.f32 %v576_v9, %v573_v14 }
  0xc2   :  { %505 = vmatpush.msrb.mxu0 %v330_v0  ;;  %544 = vmatpush.msrb.mxu1 %v855_v43 }
  0xc3   :  { %v579_v33 = vperm.slane %v577_v23, 0 }
  0xc4   :  { %509 = vmatpush.msrb.mxu0 %v336_v51  ;;  %546 = vmatpush.msrb.mxu1 %v857_v45 }
  0xc6   :  { %513 = vmatpush.msrb.mxu0 %v342_v54  ;;  %548 = vmatpush.msrb.mxu1 %v840_v31 }
  0xc8   :  { %517 = vmatpush.msrb.mxu0 %v348_v55  ;;  %550 = vmatpush.msrb.mxu1 %v912_v27 }
  0xca   :  { %521 = vmatpush.msrb.mxu0 %v354_v56  ;;  %552 = vmatpush.msrb.mxu1 %v914_v28 }
  0xcc   :  { %525 = vmatpush.msrb.mxu0 %v360_v37  ;;  %554 = vmatpush.msrb.mxu1 %v875_v58 }
  0xcd   :  { %527 = vmatmul.f32.vlgmr.msrb.gmra.mxu0 %v953_v2 }
  0xce   :  { %556 = vmatpush.msrb.mxu1 %v968_v21 }
  0xd0   :  { %558 = vmatpush.msrb.mxu1 %v970_v25 }
  0xd2   :  { %560 = vmatpush.msrb.mxu1 %v929_v46 }
  0xd4   :  { %562 = vmatpush.msrb.mxu1 %v257_v6 }
  0xd5   :  { %564 = vmatmul.f32.vlgmr.msrb.gmra.mxu1 %v953_v2 }
 0x12a   :  { %v265_v47 = vpop.f32.mrf.mxu0 }
 0x132   :  { %v366_v44 = vpop.f32.mrf.mxu1  ;;  %v459_v8 = vpop.f32.mrf.mxu3 }
 0x133   :  { %v367_v53 = vadd.f32 %v366_v44, %v265_v47  ;;  %v420_v60 = vpop.f32.mrf.mxu2 }
 0x135   :  { %v421_v4 = vadd.f32 %v420_v60, %v367_v53 }
 0x137   :  { %v460_v15 = vadd.f32 %v459_v8, %v421_v4 }
 0x14a   :  { %v528_v18 = vpop.f32.mrf.mxu0 }
 0x14b   :  { %v529_v24 = vadd.f32 %v528_v18, %v460_v15 }
 0x152   :  { %v565_v30 = vpop.f32.mrf.mxu1 }
 0x153   :  { %v566_v31 = vadd.f32 %v565_v30, %v529_v24 }
 0x155   :  { %v580_v34 = vadd.f32 %v579_v33, %v566_v31 }
 0x157   :  { %581 = vst [vmem:[#allocation5] sm:$0xff] %v580_v34 }
 0x158   :  { %592 = dma.vmem_to_hbm [thread:$0]  %s588_s24, 128, %s590_s4, [#allocation4]  }
 0x159   :  { %659 = dma.done.wait [#allocation4], 128  }
 0x15a   :  { %660 = vsyncadd [#allocation4], 4294967168 }
 0x15b   :  { %597 = vsyncpa [#allocation3], 1 }
 0x15c   :  { %598 = vsyncpa [#allocation4], 1 }

</bundles_post_ra>
